<compile_context>
chip_gen: v6e
topology: v6e:2x2x1
jax: 0.10.0
libtpu: 0.0.40
codegen_flags: <defaults>
</compile_context>

<pallas_src>
import functools

import jax
import jax.numpy as jnp
from jax.experimental import pallas as pl
from jax.experimental.pallas import tpu as pltpu


def _vmem_budget_bytes():
    """VMEM budget with headroom for Mosaic-internal scratch (generation-aware)."""
    cap = None
    try:
        info = pltpu.get_tpu_info()
        cap = getattr(info, "vmem_capacity_bytes", None)
    except Exception:
        cap = None
    if not cap or cap <= 0:
        cap = 64 * 1024 * 1024  # conservative: v7x physical VMEM per TC
    return int(cap * 0.75)      # ~25% headroom -> ~96 MiB v5e/v6e, ~48 MiB v7x


def _largest_divisor_leq(n, m):
    for d in range(min(n, m), 0, -1):
        if n % d == 0:
            return d
    return 1


# ---------------------------------------------------------------------------
# Single-pass fused kernel: Bt batch rows (Bt, C, HW) per grid step.
# ---------------------------------------------------------------------------
def _fused_kernel(x_ref, w1_ref, b1_ref, w2_ref, b2_ref, o_ref, *, bt):
    x = x_ref[...]                                   # (Bt, C, HW) in input dtype
    xf = x.astype(jnp.float32)

    # Global average / max pooling over the spatial (lane) axis.
    avg_pool = jnp.mean(xf, axis=-1)                 # (Bt, C)
    max_pool = jnp.max(xf, axis=-1)                  # (Bt, C)

    # Fused MLP: stack both pools -> a single pair of small MXU matmuls.
    p = jnp.concatenate([avg_pool, max_pool], axis=0)                     # (2*Bt, C)
    h = jnp.dot(p, w1_ref[...], preferred_element_type=jnp.float32) + b1_ref[...]
    h = jnp.maximum(h, 0.0)                                               # ReLU
    y = jnp.dot(h, w2_ref[...], preferred_element_type=jnp.float32) + b2_ref[...]

    att = y[0:bt, :] + y[bt:2 * bt, :]               # (Bt, C)
    scale = jax.nn.sigmoid(att)                      # (Bt, C)  (EUP)

    # Hoisted broadcast of the scale; pure-VPU gating multiply.
    o_ref[...] = x * scale[:, :, None].astype(x.dtype)


def _channel_gate_fused(x_flat, w1, b1_2d, w2, b2_2d, bt, vmem_limit):
    B, C, HW = x_flat.shape
    C_red = w1.shape[1]
    kernel = functools.partial(_fused_kernel, bt=bt)
    return pl.pallas_call(
        kernel,
        out_shape=jax.ShapeDtypeStruct((B, C, HW), x_flat.dtype),
        grid_spec=pltpu.PrefetchScalarGridSpec(
            num_scalar_prefetch=0,
            grid=(B // bt,),
            in_specs=[
                pl.BlockSpec((bt, C, HW), lambda b: (b, 0, 0)),   # x
                pl.BlockSpec((C, C_red), lambda b: (0, 0)),       # w1
                pl.BlockSpec((1, C_red), lambda b: (0, 0)),       # b1
                pl.BlockSpec((C_red, C), lambda b: (0, 0)),       # w2
                pl.BlockSpec((1, C), lambda b: (0, 0)),           # b2
            ],
            out_specs=pl.BlockSpec((bt, C, HW), lambda b: (b, 0, 0)),
        ),
        compiler_params=pltpu.CompilerParams(
            dimension_semantics=("parallel",),
            vmem_limit_bytes=vmem_limit,
        ),
    )(x_flat, w1, b1_2d, w2, b2_2d)


# ---------------------------------------------------------------------------
# Two-pass streaming path (batch rows that don't fit the fused-path budget).
# ---------------------------------------------------------------------------
def _pool_mlp_kernel(x_ref, w1_ref, b1_ref, w2_ref, b2_ref, scale_ref,
                     sum_sc, max_sc, *, hw_total, hw_tile, needs_mask):
    t = pl.program_id(1)
    n_t = pl.num_programs(1)

    @pl.when(t == 0)
    def _():
        sum_sc[...] = jnp.zeros_like(sum_sc)
        max_sc[...] = jnp.full_like(max_sc, -jnp.inf)

    x = x_ref[...].astype(jnp.float32)               # (1, C, hw_tile)

    # Accumulators stay in the reduction's natural (1, C, 1) layout (keepdims):
    # no per-tile sublane->lane relayout in the hot loop.
    def _accumulate(xv):
        sum_sc[...] += jnp.sum(xv, axis=-1, keepdims=True)
        max_sc[...] = jnp.maximum(max_sc[...],
                                  jnp.max(xv, axis=-1, keepdims=True))

    if needs_mask:
        # Interior tiles: unmasked fast path. Last (partial) tile: masked.
        @pl.when(t < n_t - 1)
        def _():
            _accumulate(x)

        @pl.when(t == n_t - 1)
        def _():
            lane = jax.lax.broadcasted_iota(jnp.int32, x.shape, dimension=2)
            valid = (t * hw_tile + lane) < hw_total
            sum_sc[...] += jnp.sum(jnp.where(valid, x, 0.0),
                                   axis=-1, keepdims=True)
            max_sc[...] = jnp.maximum(
                max_sc[...],
                jnp.max(jnp.where(valid, x, -jnp.inf), axis=-1, keepdims=True))
    else:
        _accumulate(x)

    @pl.when(t == n_t - 1)
    def _():
        # Single relayout (C: sublanes -> lanes) once per batch row.
        avg_pool = sum_sc[...][:, :, 0] * (1.0 / float(hw_total))         # (1, C)
        max_pool = max_sc[...][:, :, 0]                                   # (1, C)
        p = jnp.concatenate([avg_pool, max_pool], axis=0)                 # (2, C)
        h = jnp.dot(p, w1_ref[...], preferred_element_type=jnp.float32) + b1_ref[...]
        h = jnp.maximum(h, 0.0)
        y = jnp.dot(h, w2_ref[...], preferred_element_type=jnp.float32) + b2_ref[...]
        att = y[0:1, :] + y[1:2, :]                                       # (1, C)
        scale_ref[...] = jax.nn.sigmoid(att)[:, :, None]                  # (1, C, 1)


def _gate_kernel(x_ref, scale_ref, o_ref):
    # (1, C, hw_tile) * (1, C, 1) -> pure-VPU, lane-dense stores.
    x = x_ref[...]
    o_ref[...] = x * scale_ref[...].astype(x.dtype)


def _channel_gate_two_pass(x_flat, w1, b1_2d, w2, b2_2d, tile_budget, vmem_limit):
    B, C, HW = x_flat.shape
    C_red = w1.shape[1]
    elem = jnp.dtype(x_flat.dtype).itemsize

    # Pass 2 keeps ~6 tile-sized buffers resident (2x in + 2x out + slack).
    # Target at least 512 lanes for a good HBM-roofline fraction.
    hw_tile = (tile_budget // (6 * C * elem)) // 128 * 128
    hw_tile = max(hw_tile, 512)
    hw_tile = min(hw_tile, pl.cdiv(HW, 128) * 128)
    hw_tile = max(hw_tile, 128)
    n_hw = pl.cdiv(HW, hw_tile)
    needs_mask = (HW % hw_tile) != 0

    # Pass 1: streaming pooling reduction + fused MLP + sigmoid -> (B, C, 1) scale.
    scale = pl.pallas_call(
        functools.partial(_pool_mlp_kernel, hw_total=HW, hw_tile=hw_tile,
                          needs_mask=needs_mask),
        out_shape=jax.ShapeDtypeStruct((B, C, 1), jnp.float32),
        grid_spec=pltpu.PrefetchScalarGridSpec(
            num_scalar_prefetch=0,
            grid=(B, n_hw),
            in_specs=[
                pl.BlockSpec((1, C, hw_tile), lambda b, t: (b, 0, t)),   # x
                pl.BlockSpec((C, C_red), lambda b, t: (0, 0)),           # w1
                pl.BlockSpec((1, C_red), lambda b, t: (0, 0)),           # b1
                pl.BlockSpec((C_red, C), lambda b, t: (0, 0)),           # w2
                pl.BlockSpec((1, C), lambda b, t: (0, 0)),               # b2
            ],
            out_specs=pl.BlockSpec((1, C, 1), lambda b, t: (b, 0, 0)),
            scratch_shapes=[
                pltpu.VMEM((1, C, 1), jnp.float32),   # running sum (natural layout)
                pltpu.VMEM((1, C, 1), jnp.float32),   # running max (natural layout)
            ],
        ),
        compiler_params=pltpu.CompilerParams(
            dimension_semantics=("parallel", "arbitrary"),
            vmem_limit_bytes=vmem_limit,
        ),
    )(x_flat, w1, b1_2d, w2, b2_2d)

    # Pass 2: stream x again and gate with the precomputed per-channel scale.
    return pl.pallas_call(
        _gate_kernel,
        out_shape=jax.ShapeDtypeStruct((B, C, HW), x_flat.dtype),
        grid_spec=pltpu.PrefetchScalarGridSpec(
            num_scalar_prefetch=0,
            grid=(B, n_hw),
            in_specs=[
                pl.BlockSpec((1, C, hw_tile), lambda b, t: (b, 0, t)),   # x
                pl.BlockSpec((1, C, 1), lambda b, t: (b, 0, 0)),         # scale
            ],
            out_specs=pl.BlockSpec((1, C, hw_tile), lambda b, t: (b, 0, t)),
        ),
        compiler_params=pltpu.CompilerParams(
            dimension_semantics=("parallel", "parallel"),
            vmem_limit_bytes=vmem_limit,
        ),
    )(x_flat, scale)


# ---------------------------------------------------------------------------
# Public wrapper (NCHW, matching the PyTorch module's forward).
# ---------------------------------------------------------------------------
def channel_gate(x_nchw, w1, b1, w2, b2, *, tile_budget_bytes=None):
    """ChannelGate forward. x_nchw: (B, C, H, W), f32 or bf16.

    `tile_budget_bytes` is a testing knob that overrides the VMEM budget used
    for tiling decisions only (forces the streaming path when set very small);
    the compiler's vmem limit always follows the real device budget.
    """
    B, C, H, W = x_nchw.shape
    HW = H * W
    x_flat = x_nchw.reshape(B, C, HW)
    b1_2d = b1.reshape(1, -1)
    b2_2d = b2.reshape(1, -1)
    C_red = w1.shape[1]

    device_budget = _vmem_budget_bytes()
    tile_budget = tile_budget_bytes if tile_budget_bytes is not None else device_budget

    elem = jnp.dtype(x_flat.dtype).itemsize
    row_bytes = C * HW * elem
    # Double-buffered f32 weights/biases + small slack for accumulators/scratch.
    weight_bytes = 2 * 4 * (C * C_red + C_red + C_red * C + C)
    misc = 1 << 20

    # Fused-path residency: double-buffered input + output blocks + weights.
    if 4 * row_bytes + weight_bytes + misc <= tile_budget:
        bt_max = max(1, (tile_budget - weight_bytes - misc) // (4 * row_bytes))
        bt = _largest_divisor_leq(B, min(bt_max, 8))
        out_flat = _channel_gate_fused(x_flat, w1, b1_2d, w2, b2_2d,
                                       bt, device_budget)
    else:
        out_flat = _channel_gate_two_pass(x_flat, w1, b1_2d, w2, b2_2d,
                                          tile_budget, device_budget)
    return out_flat.reshape(B, C, H, W)


def _reference(x_nchw, w1, b1, w2, b2):
    # Pure-JAX reference mirroring the PyTorch forward (pool_types=['avg','max']).
    B, C, H, W = x_nchw.shape
    xf = x_nchw.astype(jnp.float32).reshape(B, C, H * W)
    avg_pool = xf.mean(axis=-1)
    max_pool = xf.max(axis=-1)

    def mlp(p):
        h = jnp.maximum(p @ w1 + b1, 0.0)
        return h @ w2 + b2

    att = mlp(avg_pool) + mlp(max_pool)
    scale = jax.nn.sigmoid(att)
    return (x_nchw.astype(jnp.float32) * scale[:, :, None, None]).astype(x_nchw.dtype)


if __name__ == "__main__":
    # Module config: gate_channels=32, reduction_ratio=4 -> hidden = 8.
    B, C, H, W = 2, 32, 16, 16
    C_red = C // 4

    key = jax.random.PRNGKey(0)
    kx, kw1, kb1, kw2, kb2, kx2 = jax.random.split(key, 6)

    x = jax.random.normal(kx, (B, C, H, W), dtype=jnp.float32)

    # Deterministic parameter init (uniform, torch.nn.Linear-style bounds).
    lim1 = 1.0 / (C ** 0.5)
    lim2 = 1.0 / (C_red ** 0.5)
    w1 = jax.random.uniform(kw1, (C, C_red), jnp.float32, -lim1, lim1)
    b1 = jax.random.uniform(kb1, (C_red,), jnp.float32, -lim1, lim1)
    w2 = jax.random.uniform(kw2, (C_red, C), jnp.float32, -lim2, lim2)
    b2 = jax.random.uniform(kb2, (C,), jnp.float32, -lim2, lim2)

    # Path 1: batch-tiled fused kernel (Bt rows per grid step).
    out = jax.block_until_ready(channel_gate(x, w1, b1, w2, b2))
    ref = _reference(x, w1, b1, w2, b2)
    assert out.shape == (B, C, H, W)
    assert jnp.allclose(out, ref, atol=1e-5, rtol=1e-5), "fused path mismatch"

    # Path 2: force the streaming two-pass path via the tiling-budget override.
    # H=W=30 -> HW=900 -> hw_tile=512, n_hw=2, partial last tile (mask exercised).
    H2, W2 = 30, 30
    x2 = jax.random.normal(kx2, (B, C, H2, W2), dtype=jnp.float32)
    out2 = jax.block_until_ready(
        channel_gate(x2, w1, b1, w2, b2, tile_budget_bytes=256 * 1024))
    ref2 = _reference(x2, w1, b1, w2, b2)
    assert jnp.allclose(out2, ref2, atol=1e-5, rtol=1e-5), "two-pass mismatch"

    print("KERNEL_OK")
</pallas_src>

<mosaic_0001>
module attributes {stable_mosaic.version = 11 : i64} {
  func.func @_fused_kernel(%arg0: i32, %arg1: memref<2x32x256xf32, #tpu.memory_space<vmem>>, %arg2: memref<32x8xf32, #tpu.memory_space<vmem>>, %arg3: memref<1x8xf32, #tpu.memory_space<vmem>>, %arg4: memref<8x32xf32, #tpu.memory_space<vmem>>, %arg5: memref<1x32xf32, #tpu.memory_space<vmem>>, %arg6: memref<2x32x256xf32, #tpu.memory_space<vmem>>) attributes {dimension_semantics = [#tpu.dimension_semantics<parallel>], iteration_bounds = array<i64: 1>, scalar_prefetch = 0 : i64, scratch_operands = 0 : i64, tpu.core_type = #tpu.core_type<tc>, window_params = [{transform_indices = @transform_0, window_bounds = array<i64: 2, 32, 256>}, {pipeline_mode = #tpu.pipeline_mode<synchronous>, transform_indices = @transform_1, window_bounds = array<i64: 32, 8>}, {pipeline_mode = #tpu.pipeline_mode<synchronous>, transform_indices = @transform_2, window_bounds = array<i64: 1, 8>}, {pipeline_mode = #tpu.pipeline_mode<synchronous>, transform_indices = @transform_3, window_bounds = array<i64: 8, 32>}, {pipeline_mode = #tpu.pipeline_mode<synchronous>, transform_indices = @transform_4, window_bounds = array<i64: 1, 32>}, {transform_indices = @transform_5, window_bounds = array<i64: 2, 32, 256>}]} {
    %c0 = arith.constant 0 : index
    %c0_0 = arith.constant 0 : index
    %c0_1 = arith.constant 0 : index
    %0 = vector.load %arg1[%c0, %c0_0, %c0_1] : memref<2x32x256xf32, #tpu.memory_space<vmem>>, vector<2x32x256xf32>
    %cst = arith.constant dense<0.000000e+00> : vector<2x32xf32>
    %1 = vector.multi_reduction <add>, %0, %cst [2] : vector<2x32x256xf32> to vector<2x32xf32>
    %cst_2 = arith.constant 2.560000e+02 : f32
    %2 = vector.broadcast %cst_2 : f32 to vector<2x32xf32>
    %3 = arith.divf %1, %2 : vector<2x32xf32>
    %cst_3 = arith.constant dense<0xFF800000> : vector<2x32xf32>
    %4 = vector.multi_reduction <maximumf>, %0, %cst_3 [2] : vector<2x32x256xf32> to vector<2x32xf32>
    %5 = tpu.concatenate %3, %4 in 0 : vector<2x32xf32>, vector<2x32xf32> -> vector<4x32xf32>
    %c0_4 = arith.constant 0 : index
    %c0_5 = arith.constant 0 : index
    %6 = vector.load %arg2[%c0_4, %c0_5] : memref<32x8xf32, #tpu.memory_space<vmem>>, vector<32x8xf32>
    %cst_6 = arith.constant dense<0.000000e+00> : vector<4x8xf32>
    %7 = tpu.matmul %5, %6, %cst_6 {dimension_numbers = #tpu.dot_dimension_numbers<[1], [0], [0], [1], [0, 0, 1, 1], [], []>} : vector<4x32xf32>, vector<32x8xf32>, vector<4x8xf32> -> vector<4x8xf32>
    %c0_7 = arith.constant 0 : index
    %c0_8 = arith.constant 0 : index
    %8 = vector.load %arg3[%c0_7, %c0_8] : memref<1x8xf32, #tpu.memory_space<vmem>>, vector<1x8xf32>
    %9 = vector.broadcast %8 : vector<1x8xf32> to vector<4x8xf32>
    %10 = arith.addf %7, %9 : vector<4x8xf32>
    %cst_9 = arith.constant 0.000000e+00 : f32
    %11 = vector.broadcast %cst_9 : f32 to vector<4x8xf32>
    %12 = arith.maximumf %10, %11 : vector<4x8xf32>
    %c0_10 = arith.constant 0 : index
    %c0_11 = arith.constant 0 : index
    %13 = vector.load %arg4[%c0_10, %c0_11] : memref<8x32xf32, #tpu.memory_space<vmem>>, vector<8x32xf32>
    %cst_12 = arith.constant dense<0.000000e+00> : vector<4x32xf32>
    %14 = tpu.matmul %12, %13, %cst_12 {dimension_numbers = #tpu.dot_dimension_numbers<[1], [0], [0], [1], [0, 0, 1, 1], [], []>} : vector<4x8xf32>, vector<8x32xf32>, vector<4x32xf32> -> vector<4x32xf32>
    %c0_13 = arith.constant 0 : index
    %c0_14 = arith.constant 0 : index
    %15 = vector.load %arg5[%c0_13, %c0_14] : memref<1x32xf32, #tpu.memory_space<vmem>>, vector<1x32xf32>
    %16 = vector.broadcast %15 : vector<1x32xf32> to vector<4x32xf32>
    %17 = arith.addf %14, %16 : vector<4x32xf32>
    %18 = vector.extract_strided_slice %17 {offsets = [0, 0], sizes = [2, 32], strides = [1, 1]} : vector<4x32xf32> to vector<2x32xf32>
    %19 = vector.extract_strided_slice %17 {offsets = [2, 0], sizes = [2, 32], strides = [1, 1]} : vector<4x32xf32> to vector<2x32xf32>
    %20 = arith.addf %18, %19 : vector<2x32xf32>
    %21 = arith.negf %20 : vector<2x32xf32>
    %22 = math.exp %21 : vector<2x32xf32>
    %cst_15 = arith.constant 1.000000e+00 : f32
    %23 = vector.broadcast %cst_15 : f32 to vector<2x32xf32>
    %24 = arith.addf %23, %22 : vector<2x32xf32>
    %25 = arith.divf %23, %24 : vector<2x32xf32>
    %26 = vector.shape_cast %25 : vector<2x32xf32> to vector<2x32x1xf32>
    %27 = vector.broadcast %26 : vector<2x32x1xf32> to vector<2x32x256xf32>
    %28 = arith.mulf %0, %27 : vector<2x32x256xf32>
    %c0_16 = arith.constant 0 : index
    %c0_17 = arith.constant 0 : index
    %c0_18 = arith.constant 0 : index
    %29 = vector.load %arg6[%c0_16, %c0_17, %c0_18] : memref<2x32x256xf32, #tpu.memory_space<vmem>>, vector<2x32x256xf32>
    tpu.vector_store %arg6[%c0_16, %c0_17, %c0_18], %28 {strides = array<i32>} : memref<2x32x256xf32, #tpu.memory_space<vmem>>, vector<2x32x256xf32>,
    return
  }
  func.func @transform_0(%arg0: i32) -> (i32, i32, i32) {
    %c0_i32 = arith.constant 0 : i32
    %c0_i32_0 = arith.constant 0 : i32
    %c0_i32_1 = arith.constant 0 : i32
    return %arg0, %c0_i32, %c0_i32_0 : i32, i32, i32
  }
  func.func @transform_1(%arg0: i32) -> (i32, i32) {
    %c0_i32 = arith.constant 0 : i32
    %c0_i32_0 = arith.constant 0 : i32
    %c0_i32_1 = arith.constant 0 : i32
    return %c0_i32, %c0_i32_0 : i32, i32
  }
  func.func @transform_2(%arg0: i32) -> (i32, i32) {
    %c0_i32 = arith.constant 0 : i32
    %c0_i32_0 = arith.constant 0 : i32
    %c0_i32_1 = arith.constant 0 : i32
    return %c0_i32, %c0_i32_0 : i32, i32
  }
  func.func @transform_3(%arg0: i32) -> (i32, i32) {
    %c0_i32 = arith.constant 0 : i32
    %c0_i32_0 = arith.constant 0 : i32
    %c0_i32_1 = arith.constant 0 : i32
    return %c0_i32, %c0_i32_0 : i32, i32
  }
  func.func @transform_4(%arg0: i32) -> (i32, i32) {
    %c0_i32 = arith.constant 0 : i32
    %c0_i32_0 = arith.constant 0 : i32
    %c0_i32_1 = arith.constant 0 : i32
    return %c0_i32, %c0_i32_0 : i32, i32
  }
  func.func @transform_5(%arg0: i32) -> (i32, i32, i32) {
    %c0_i32 = arith.constant 0 : i32
    %c0_i32_0 = arith.constant 0 : i32
    %c0_i32_1 = arith.constant 0 : i32
    return %arg0, %c0_i32, %c0_i32_0 : i32, i32, i32
  }
}

</mosaic_0001>

<bundles_post_ra>
// kernel: tpu_custom_call.1
= control target key start
LH: loop header
LB: loop body
LE: loop exit
PB: predicated region body
PF: predicated region fallthrough
CT: control target
= control target key end

     0   :  { %10 = vsyncpa [#allocation3], 0  ;;  %s734_s0 = inlined_call_operand.hbm [shape: f32[2,32,256], index: 0, kind: input, shape index: {}]   ;;  %s735_s1 = inlined_call_operand.vmem [shape: f32[32,8], index: 1, kind: input, shape index: {}]   ;;  %s736_s2 = inlined_call_operand.vmem [shape: f32[1,8], index: 2, kind: input, shape index: {}]   ;;  %s737_s3 = inlined_call_operand.vmem [shape: f32[8,32], index: 3, kind: input, shape index: {}]   ;;  %s738_s4 = inlined_call_operand.vmem [shape: f32[1,32], index: 4, kind: input, shape index: {}]   ;;  %s739_s5 = inlined_call_operand.hbm [shape: f32[2,32,256], index: 5, kind: output, shape index: {}]  }
   0x1   :  { %11 = vsyncpa [#allocation4], 0  ;;  %s563_s18 = smov [#allocation2]  }
   0x2   :  { %s17_s19 = sshll.u32 %s563_s18, 4  ;;  %s18_s19 = int_to_ptr.vmem [resolvable:$true] %s17_s19 }
   0x3   :  { %s527_s20 = scalar_lea.vmem %s18_s19, 2048  ;;  %p532_p1 = scmp.lt.s32.totalorder %s18_s19, %s18_s19 }
   0x4   :  { %p528_p0 = scmp.ne.s32.totalorder %s18_s19, %s527_s20  ;;  %p533_p2 = scmp.lt.s32.totalorder %s527_s20, %s527_s20 }
   0x6   :  { %p534_p3 = por %p533_p2, %p532_p1 }
   0x8   :  { %p535_p4 = pnand %p534_p3, %p528_p0 }
   0xa   :  { %538 = shalt.err (!%p535_p4)
}
   0xb   :  { %s564_s21 = smov 256   ;;  %s565_s22 = smov 16  }
   0xc   :  { %23 = dma.hbm_to_vmem [thread:$0]  %s734_s0, 2048, %s18_s19, [#allocation3], %s564_s21, %s564_s21, %s565_s22  }
   0xd   :  { %559 = dma.done.wait [#allocation3], 2048  }
   0xe   :  { %560 = vsyncadd [#allocation3], 4294965248  ;;  %v605_v0 = vld [vmem:[#allocation2 + $0x40] sm:$0xff]  ;;  %v607_v1 = vld [vmem:[#allocation2 + $0x48] sm:$0xff]  ;;  %v566_v32 = vmov 0.0   ;;  %vm567_vm0 = vmmov 0   ;;  %v116_v42 = vlaneseq }
   0xf   :  { %v609_v2 = vld [vmem:[#allocation2] sm:$0xff]  ;;  %v63_v3 = vadd.f32 %v607_v1, %v605_v0  ;;  %v613_v4 = vld [vmem:[#allocation2 + $0x8] sm:$0xff]  ;;  %v615_v5 = vld [vmem:[#allocation2 + $0x50] sm:$0xff]  ;;  %v96_v27 = vmax.f32 %v605_v0, %v607_v1  ;;  %493 = vmatprep.subr.mxu0 %v566_v32  ;;  %504 = vmatprep.subr.mxu1 %v566_v32  ;;  %vm127_vm1 = vcmask 130112   ;;  %vm134_vm2 = vcmask 195712  }
  0x10   :  { %v617_v6 = vld [vmem:[#allocation2 + $0x58] sm:$0xff]  ;;  %v51_v7 = vadd.f32 %v613_v4, %v609_v2  ;;  %v621_v8 = vld [vmem:[#allocation2 + $0x10] sm:$0xff]  ;;  %v629_v12 = vld [vmem:[#allocation2 + $0x60] sm:$0xff]  ;;  %v84_v25 = vmax.f32 %v609_v2, %v613_v4  ;;  %501 = vmatprep.mubr.msk.f32.mxu0 %vm567_vm0, %v566_v32  ;;  %506 = vmatprep.mubr.msk.f32.mxu1 %vm567_vm0, %v566_v32  ;;  %v117_v45 = vand.u32 127, %v116_v42  ;;  %v681_v47 = vshrl.u32 %v116_v42, 7 }
  0x11   :  { %v623_v9 = vld [vmem:[#allocation2 + $0x18] sm:$0xff]  ;;  %64 = vadd.xlane.f32.xlu1 %v63_v3  ;;  %v66_v10 = vadd.f32 %v617_v6, %v615_v5  ;;  %v631_v13 = vld [vmem:[#allocation2 + $0x68] sm:$0xff]  ;;  %v633_v14 = vld [vmem:[#allocation2 + $0x20] sm:$0xff]  ;;  %v99_v26 = vmax.f32 %v615_v5, %v617_v6  ;;  %vm141_vm3 = vcmask 261312   ;;  %vm162_vm4 = vcmask 1041409  }
  0x12   :  { %52 = vadd.xlane.f32.xlu0 %v51_v7  ;;  %v54_v11 = vadd.f32 %v623_v9, %v621_v8  ;;  %v635_v15 = vld [vmem:[#allocation2 + $0x28] sm:$0xff]  ;;  %v69_v16 = vadd.f32 %v631_v13, %v629_v12  ;;  %v641_v18 = vld [vmem:[#allocation2 + $0x70] sm:$0xff]  ;;  %v643_v19 = vld [vmem:[#allocation2 + $0x78] sm:$0xff]  ;;  %v87_v24 = vmax.f32 %v621_v8, %v623_v9  ;;  %v102_v28 = vmax.f32 %v629_v12, %v631_v13 }
  0x13   :  { %v57_v17 = vadd.f32 %v635_v15, %v633_v14  ;;  %v645_v20 = vld [vmem:[#allocation2 + $0x30] sm:$0xff]  ;;  %v647_v21 = vld [vmem:[#allocation2 + $0x38] sm:$0xff]  ;;  %v72_v22 = vadd.f32 %v643_v19, %v641_v18  ;;  %v90_v29 = vmax.f32 %v633_v14, %v635_v15  ;;  %v105_v30 = vmax.f32 %v641_v18, %v643_v19  ;;  %v217_v35 = vld [vmem:[%s735_s1 + $0x8] sm:$0xff] }
  0x14   :  { %v60_v23 = vadd.f32 %v647_v21, %v645_v20  ;;  %v93_v31 = vmax.f32 %v645_v20, %v647_v21  ;;  %v219_v33 = vld [vmem:[%s735_s1 + $0x18] sm:$0xff]  ;;  %v218_v34 = vld [vmem:[%s735_s1 + $0x10] sm:$0xff]  ;;  %v216_v36 = vld [vmem:[%s735_s1] sm:$0xff]  ;;  %v122_v48 = vadd.s32 4294967288, %v117_v45  ;;  %v129_v49 = vadd.s32 4294967280, %v117_v45 }
  0x15   :  { %67 = vadd.xlane.f32.xlu1 %v66_v10  ;;  %494 = vmatpush3.msra.mxu0 %v219_v33  ;;  %v136_v51 = vadd.s32 4294967272, %v117_v45  ;;  %v120_v53 = vsub.s32 %v117_v45, %v681_v47  ;;  %vm211_vm5 = vcmask 1043459   ;;  %vm214_vm6 = vcmask 1041408  }
  0x16   :  { %55 = vadd.xlane.f32.xlu0 %v54_v11  ;;  %495 = vmatprep.subr.mxu0 %v566_v32  ;;  %v125_v54 = vsub.s32 %v122_v48, %v681_v47  ;;  %v132_v56 = vsub.s32 %v129_v49, %v681_v47  ;;  %vm227_vm7 = vcmask 261120   ;;  %vm310_vm8 = vcmask 64512  }
  0x17   :  { %496 = vmatpush3.msra.mxu0 %v218_v34  ;;  %v139_v63 = vsub.s32 %v136_v51, %v681_v47 }
  0x18   :  { %497 = vmatprep.subr.mxu0 %v566_v32 }
  0x19   :  { %70 = vadd.xlane.f32.xlu1 %v69_v16  ;;  %498 = vmatpush3.msra.mxu0 %v217_v35 }
  0x1a   :  { %58 = vadd.xlane.f32.xlu0 %v57_v17  ;;  %499 = vmatprep.subr.mxu0 %v566_v32 }
  0x1b   :  { %500 = vmatpush3.msra.mxu0 %v216_v36 }
  0x1d   :  { %73 = vadd.xlane.f32.xlu1 %v72_v22 }
  0x1e   :  { %61 = vadd.xlane.f32.xlu0 %v60_v23 }
  0x21   :  { %88 = vmax.xlane.f32.xlu1 %v87_v24 }
  0x22   :  { %85 = vmax.xlane.f32.xlu0 %v84_v25 }
  0x25   :  { %100 = vmax.xlane.f32.xlu1 %v99_v26 }
  0x26   :  { %97 = vmax.xlane.f32.xlu0 %v96_v27 }
  0x29   :  { %103 = vmax.xlane.f32.xlu1 %v102_v28 }
  0x2a   :  { %91 = vmax.xlane.f32.xlu0 %v90_v29 }
  0x2d   :  { %106 = vmax.xlane.f32.xlu1 %v105_v30 }
  0x2e   :  { %94 = vmax.xlane.f32.xlu0 %v93_v31 }
  0x9a   :  { %v65_v37 = vpop.xlane.xlu1 %64 }
  0x9b   :  { %v53_v38 = vpop.xlane.xlu0 %52  ;;  %v80_v57 = vmul.f32 0.00390625, %v65_v37 }
  0x9c   :  { %v76_v58 = vmul.f32 0.00390625, %v53_v38 }
  0x9d   :  { %v146_v16 = vrot.slane %v80_v57, %v120_v53 }
  0x9e   :  { %v68_v39 = vpop.xlane.xlu1 %67  ;;  %v121_v17 = vrot.slane %v76_v58, %v120_v53 }
  0x9f   :  { %v56_v40 = vpop.xlane.xlu0 %55  ;;  %v81_v55 = vmul.f32 0.00390625, %v68_v39 }
  0xa0   :  { %v77_v59 = vmul.f32 0.00390625, %v56_v40 }
  0xa1   :  { %v150_v11 = vrot.slane %v81_v55, %v125_v54  ;;  %v302_v55 = vld [vmem:[%s737_s3] sm:$0xff] }
  0xa2   :  { %v71_v41 = vpop.xlane.xlu1 %70  ;;  %v126_v22 = vrot.slane %v77_v59, %v125_v54  ;;  %505 = vmatpush3.msra.mxu1 %v302_v55 }
  0xa3   :  { %v59_v43 = vpop.xlane.xlu0 %58  ;;  %v82_v60 = vmul.f32 0.00390625, %v71_v41  ;;  %v151_v34 = vsel %vm127_vm1, %v150_v11, %v146_v16 }
  0xa4   :  { %v78_v62 = vmul.f32 0.00390625, %v59_v43  ;;  %v128_v36 = vsel %vm127_vm1, %v126_v22, %v121_v17  ;;  %v396_v22 = vsub.s32 0, %v681_v47 }
  0xa5   :  { %v155_v23 = vrot.slane %v82_v60, %v132_v56 }
  0xa6   :  { %v74_v44 = vpop.xlane.xlu1 %73  ;;  %v133_v25 = vrot.slane %v78_v62, %v132_v56 }
  0xa7   :  { %v62_v46 = vpop.xlane.xlu0 %61  ;;  %v83_v3 = vmul.f32 0.00390625, %v74_v44  ;;  %v156_v37 = vsel %vm134_vm2, %v155_v23, %v151_v34 }
  0xa8   :  { %v79_v10 = vmul.f32 0.00390625, %v62_v46  ;;  %v135_v39 = vsel %vm134_vm2, %v133_v25, %v128_v36  ;;  %v415_v25 = vsub.s32 1, %v681_v47 }
  0xa9   :  { %v160_v26 = vrot.slane %v83_v3, %v139_v63 }
  0xaa   :  { %v89_v50 = vpop.xlane.xlu1 %88  ;;  %v140_v30 = vrot.slane %v79_v10, %v139_v63 }
  0xab   :  { %v86_v52 = vpop.xlane.xlu0 %85  ;;  %v180_v31 = vrot.slane %v89_v50, %v125_v54  ;;  %v161_v40 = vsel %vm141_vm3, %v160_v26, %v156_v37 }
  0xac   :  { %v176_v32 = vrot.slane %v86_v52, %v120_v53  ;;  %v142_v44 = vsel %vm141_vm3, %v140_v30, %v135_v39 }
  0xad   :  { %v163_v52 = vsel %vm162_vm4, %v161_v40, %v142_v44 }
  0xae   :  { %v101_v61 = vpop.xlane.xlu1 %100  ;;  %v181_v45 = vsel %vm127_vm1, %v180_v31, %v176_v32 }
  0xaf   :  { %v98_v7 = vpop.xlane.xlu0 %97  ;;  %v199_v27 = vrot.slane %v101_v61, %v125_v54  ;;  %v483_v61 = vld [vmem:[%s738_s4] ss:$0 sm:$0xff] }
  0xb0   :  { %v195_v28 = vrot.slane %v98_v7, %v120_v53 }
  0xb2   :  { %v104_v24 = vpop.xlane.xlu1 %103  ;;  %v200_v41 = vsel %vm127_vm1, %v199_v27, %v195_v28 }
  0xb3   :  { %v92_v29 = vpop.xlane.xlu0 %91  ;;  %v204_v33 = vrot.slane %v104_v24, %v132_v56 }
  0xb4   :  { %v185_v35 = vrot.slane %v92_v29, %v132_v56  ;;  %v481_v56 = vld [vmem:[%s736_s2] ss:$0 sm:$0xff]  ;;  %s568_s2 = smov [#allocation5]  }
  0xb5   :  { %v205_v46 = vsel %vm134_vm2, %v204_v33, %v200_v41  ;;  %s469_s3 = sshll.u32 %s568_s2, 4  ;;  %s470_s3 = int_to_ptr.vmem [resolvable:$true] %s469_s3 }
  0xb6   :  { %v107_v38 = vpop.xlane.xlu1 %106  ;;  %v186_v49 = vsel %vm134_vm2, %v185_v35, %v181_v45  ;;  %s539_s4 = scalar_lea.vmem %s470_s3, 2048  ;;  %p544_p6 = scmp.lt.s32.totalorder %s470_s3, %s470_s3 }
  0xb7   :  { %v209_v42 = vrot.slane %v107_v38, %v139_v63  ;;  %v95_v43 = vpop.xlane.xlu0 %94  ;;  %p540_p5 = scmp.ne.s32.totalorder %s470_s3, %s539_s4  ;;  %p545_p7 = scmp.lt.s32.totalorder %s539_s4, %s539_s4 }
  0xb8   :  { %v190_v48 = vrot.slane %v95_v43, %v139_v63 }
  0xb9   :  { %v210_v50 = vsel %vm141_vm3, %v209_v42, %v205_v46  ;;  %p546_p8 = por %p545_p7, %p544_p6 }
  0xba   :  { %v191_v51 = vsel %vm141_vm3, %v190_v48, %v186_v49 }
  0xbb   :  { %v212_v53 = vsel %vm211_vm5, %v210_v50, %v191_v51  ;;  %p547_p9 = pnand %p546_p8, %p540_p5 }
  0xbc   :  { %v215_v54 = vsel %vm214_vm6, %v163_v52, %v212_v53 }
  0xbd   :  { %502 = vmatmul.mubr.msk.f32.vlgmr.msra.gmra.mxu0 %vm227_vm7, %v215_v54 }
 0x17d   :  { %v297_v57 = vpop.f32.mrf.mxu0 }
 0x17e   :  { %v298_v58 = vadd.f32 %v481_v56, %v297_v57 }
 0x17f   :  { %v503_v59 = vpop.f32.mrf.mxu0 }
 0x180   :  { %v301_v60 = vmax.f32 %v298_v58, 0.0 }
 0x182   :  { %507 = vmatmul.mubr.msk.f32.vlgmr.msra.gmra.mxu1 %vm310_vm8, %v301_v60 }
 0x242   :  { %v380_v62 = vpop.f32.mrf.mxu1 }
 0x243   :  { %v381_v63 = vadd.f32 %v483_v61, %v380_v62 }
 0x244   :  { %v508_v3 = vpop.f32.mrf.mxu1 }
 0x245   :  { %v385_v7 = vrot.slane %v381_v63, 2 }
 0x247   :  { %v387_v10 = vadd.f32 %v385_v7, %v381_v63 }
 0x249   :  { %v485_v11 = vmul.f32 -1.442695, %v387_v10 }
 0x24b   :  { %515 = vpow2.f32 %v485_v11 }
 0x258   :  { %v516_v16 = vpop.eup %515 }
 0x259   :  { %v391_v17 = vadd.f32 1.0, %v516_v16 }
 0x25b   :  { %517 = vrcp.f32 %v391_v17 }
 0x268   :  { %v518_v23 = vpop.eup %517 }
 0x269   :  { %v397_v24 = vrot.slane %v518_v23, %v396_v22  ;;  %v416_v26 = vrot.slane %v518_v23, %v415_v25 }
 0x26b   :  { %403 = vbcast.lane.b32.xlu1 %v397_v24, 264  ;;  %399 = vbcast.lane.b32.xlu0 %v397_v24, 256 }
 0x26f   :  { %407 = vbcast.lane.b32.xlu1 %v397_v24, 272  ;;  %418 = vbcast.lane.b32.xlu0 %v416_v26, 256 }
 0x273   :  { %411 = vbcast.lane.b32.xlu1 %v397_v24, 280  ;;  %426 = vbcast.lane.b32.xlu0 %v416_v26, 272 }
 0x277   :  { %422 = vbcast.lane.b32.xlu1 %v416_v26, 264 }
 0x27b   :  { %430 = vbcast.lane.b32.xlu1 %v416_v26, 280 }
 0x2dd   :  { %v404_v27 = vpop.permute.xlu1 %403  ;;  %v400_v28 = vpop.permute.xlu0 %399 }
 0x2de   :  { %v434_v29 = vmul.f32 %v404_v27, %v621_v8  ;;  %v435_v30 = vmul.f32 %v404_v27, %v623_v9  ;;  %v432_v31 = vmul.f32 %v400_v28, %v609_v2  ;;  %v433_v32 = vmul.f32 %v400_v28, %v613_v4 }
 0x2e0   :  { %450 = vst [vmem:[#allocation5 + $0x10] sm:$0xff] %v434_v29  ;;  %451 = vst [vmem:[#allocation5 + $0x18] sm:$0xff] %v435_v30 }
 0x2e1   :  { %448 = vst [vmem:[#allocation5] sm:$0xff] %v432_v31  ;;  %449 = vst [vmem:[#allocation5 + $0x8] sm:$0xff] %v433_v32  ;;  %v408_v47 = vpop.permute.xlu1 %407  ;;  %v419_v33 = vpop.permute.xlu0 %418 }
 0x2e2   :  { %v436_v34 = vmul.f32 %v408_v47, %v633_v14  ;;  %v437_v35 = vmul.f32 %v408_v47, %v635_v15  ;;  %v440_v36 = vmul.f32 %v419_v33, %v605_v0  ;;  %v441_v8 = vmul.f32 %v419_v33, %v607_v1 }
 0x2e4   :  { %452 = vst [vmem:[#allocation5 + $0x20] sm:$0xff] %v436_v34  ;;  %453 = vst [vmem:[#allocation5 + $0x28] sm:$0xff] %v437_v35 }
 0x2e5   :  { %456 = vst [vmem:[#allocation5 + $0x40] sm:$0xff] %v440_v36  ;;  %457 = vst [vmem:[#allocation5 + $0x48] sm:$0xff] %v441_v8  ;;  %v412_v2 = vpop.permute.xlu1 %411  ;;  %v427_v4 = vpop.permute.xlu0 %426 }
 0x2e6   :  { %v438_v9 = vmul.f32 %v412_v2, %v645_v20  ;;  %v439_v37 = vmul.f32 %v412_v2, %v647_v21  ;;  %v444_v38 = vmul.f32 %v427_v4, %v629_v12  ;;  %v445_v14 = vmul.f32 %v427_v4, %v631_v13 }
 0x2e8   :  { %454 = vst [vmem:[#allocation5 + $0x30] sm:$0xff] %v438_v9  ;;  %455 = vst [vmem:[#allocation5 + $0x38] sm:$0xff] %v439_v37 }
 0x2e9   :  { %460 = vst [vmem:[#allocation5 + $0x60] sm:$0xff] %v444_v38  ;;  %461 = vst [vmem:[#allocation5 + $0x68] sm:$0xff] %v445_v14  ;;  %v423_v0 = vpop.permute.xlu1 %422 }
 0x2ea   :  { %v442_v1 = vmul.f32 %v423_v0, %v615_v5  ;;  %v443_v15 = vmul.f32 %v423_v0, %v617_v6 }
 0x2ec   :  { %458 = vst [vmem:[#allocation5 + $0x50] sm:$0xff] %v442_v1  ;;  %459 = vst [vmem:[#allocation5 + $0x58] sm:$0xff] %v443_v15 }
 0x2ed   :  { %v431_v20 = vpop.permute.xlu1 %430 }
 0x2ee   :  { %v446_v21 = vmul.f32 %v431_v20, %v641_v18  ;;  %v447_v12 = vmul.f32 %v431_v20, %v643_v19 }
 0x2f0   :  { %462 = vst [vmem:[#allocation5 + $0x70] sm:$0xff] %v446_v21  ;;  %463 = vst [vmem:[#allocation5 + $0x78] sm:$0xff] %v447_v12 }
 0x2f1   :  { %550 = shalt.err (!%p547_p9)
}
 0x2f2   :  { %475 = dma.vmem_to_hbm [thread:$0]  %s470_s3, 2048, %s739_s5, [#allocation4], %s564_s21, %s564_s21, %s565_s22  }
 0x2f3   :  { %561 = dma.done.wait [#allocation4], 2048  }
 0x2f4   :  { %562 = vsyncadd [#allocation4], 4294965248 }
 0x2f5   :  { %479 = vsyncpa [#allocation3], 1 }
 0x2f6   :  { %480 = vsyncpa [#allocation4], 1 }

</bundles_post_ra>
